<compile_context>
chip_gen: v6e
topology: v6e:2x2x1
jax: 0.10.0
libtpu: 0.0.40
codegen_flags: <defaults>
</compile_context>

<pallas_src>
import functools

import jax
import jax.numpy as jnp
from jax.experimental import pallas as pl
from jax.experimental.pallas import tpu as pltpu


def _round_up(x, m):
    return -(-x // m) * m


def _self_attention_kernel(q_ref, v_ref, w1_ref, b1_ref, vw_ref, vb_ref,
                           ctx_ref, attn_ref, score_ref,
                           *, t_valid, dout_chunk, compute_dtype):
    Bt, T, Din = q_ref.shape
    Dout = w1_ref.shape[1]

    # Fold batch into the MXU M dimension.  T is padded to a multiple of 8 in
    # the wrapper, so collapsing the two leading dims is a tiled-layout no-op.
    q2 = q_ref[...].reshape(Bt * T, Din).astype(compute_dtype)

    # ---- score = Vw . tanh(q @ W1 + b1) + Vb, chunked over Dout -------------
    # Chunking bounds the live (Bt*T, chunk) intermediate so large Dout does
    # not spill the vreg file; the Vw projection is a VPU broadcast-mul +
    # lane (XLU) reduce, not a 1-column MXU matmul.
    score = None
    for c0 in range(0, Dout, dout_chunk):
        cw = min(dout_chunk, Dout - c0)
        w1_c = w1_ref[:, c0:c0 + cw].astype(compute_dtype)
        h = jnp.dot(q2, w1_c, preferred_element_type=jnp.float32)
        h = jnp.tanh(h + b1_ref[:, c0:c0 + cw])                   # (Bt*T, cw) f32
        part = jnp.sum(h.reshape(Bt, T, cw) * vw_ref[:, c0:c0 + cw],
                       axis=-1)                                   # (Bt, T)
        score = part if score is None else score + part
    score = score + vb_ref[0]
    score_ref[...] = score

    # ---- softmax over the (lane-axis) sequence dim; mask padded columns -----
    if t_valid < T:
        t_idx = jax.lax.broadcasted_iota(jnp.int32, (Bt, T), 1)
        score_sm = jnp.where(t_idx < t_valid, score, jnp.float32(-1e30))
    else:
        score_sm = score
    m = jnp.max(score_sm, axis=-1, keepdims=True)
    e = jnp.exp(score_sm - m)
    s = jnp.sum(e, axis=-1, keepdims=True)
    inv = pl.reciprocal(s, approx=True)        # EUP slot (near-free)
    for _ in range(2):                         # Newton steps -> f32 accuracy
        inv = inv * (2.0 - s * inv)
    attn = e * inv                                                # (Bt, T)
    attn_ref[...] = attn

    # ---- context[b, d] = sum_t attn[b, t] * values[b, t, d] -----------------
    # VPU broadcast-mul + sublane reduce instead of Bt separate M=1 MXU
    # matmuls: uses otherwise-idle VPU/XLU slots and keeps the MXU free.
    ctx = jnp.sum(attn[:, :, None] * v_ref[...], axis=1)          # (Bt, Dv)
    ctx_ref[...] = ctx.astype(ctx_ref.dtype)


def self_attention(query, values, w1, b1, vw, vb, *, block_b=None,
                   compute_dtype=jnp.float32,
                   vmem_budget_bytes=16 * 1024 * 1024):
    """query (B,T,Din), values (B,T,Dv) -> (context (B,Dv), attn (B,T,1), score (B,T,1))."""
    B, T, Din = query.shape
    Dv = values.shape[-1]
    Dout = w1.shape[-1]

    # ---- pad T to a multiple of 8 (masked inside the kernel) ----------------
    T_p = _round_up(T, 8)
    if T_p != T:
        query = jnp.pad(query, ((0, 0), (0, T_p - T), (0, 0)))
        values = jnp.pad(values, ((0, 0), (0, T_p - T), (0, 0)))

    # ---- VMEM-budgeted batch tile (generation-safe: 16 MiB fits v5e's default
    # scoped limit; v6e/v7x get the explicit vmem_limit_bytes below) ----------
    el = 4  # f32 storage
    row_in = T_p * (Din + Dv) * el             # query + values bytes / batch row
    row_out = (Dv + 2 * T_p) * el              # ctx + attn + score bytes / row
    row_bytes = 2 * (row_in + row_out)         # x2: double-buffered pipeline
    weight_bytes = 2 * (Din * Dout + 2 * Dout) * el  # W1/b1/Vw (resident, dbl-buffered)

    if block_b is None:
        avail = max(vmem_budget_bytes - weight_bytes, row_bytes)
        fit = int(avail // row_bytes)
        if fit >= B:
            block_b = B
        else:
            # TODO(synk): if even 8 rows exceed the budget (very long T), add a
            # T-tiled grid axis with an online (flash-style) softmax.
            block_b = max(8, (fit // 8) * 8)
        min_steps = 4  # >=2 steps per v7x TensorCore + DMA/compute overlap
        if B >= min_steps * 8:
            block_b = min(block_b, max(8, ((-(-B // min_steps)) // 8) * 8))
    block_b = int(block_b)
    if block_b >= B:
        block_b = B
    elif block_b % 8:
        # Tiled 2-D output blocks need a sublane-aligned (multiple-of-8) batch
        # tile; round DOWN so we never inflate past the VMEM budget.
        block_b = max(8, (block_b // 8) * 8)

    num_blocks = -(-B // block_b)
    Bp = num_blocks * block_b
    if Bp != B:
        query = jnp.pad(query, ((0, Bp - B), (0, 0), (0, 0)))
        values = jnp.pad(values, ((0, Bp - B), (0, 0), (0, 0)))

    est_bytes = block_b * row_bytes + weight_bytes
    vmem_limit = int(min(48 << 20, max(est_bytes + (8 << 20), 32 << 20)))

    # Lane-aligned row for the V projection; scalar bias in SMEM.
    vw_row = vw.reshape(1, Dout).astype(jnp.float32)
    vb_s = vb.reshape((1,)).astype(jnp.float32)
    b1 = b1.reshape(1, Dout)

    kernel = functools.partial(
        _self_attention_kernel,
        t_valid=T, dout_chunk=min(Dout, 512), compute_dtype=compute_dtype)

    grid_spec = pltpu.PrefetchScalarGridSpec(
        num_scalar_prefetch=0,
        grid=(num_blocks,),
        in_specs=[
            pl.BlockSpec((block_b, T_p, Din), lambda b: (b, 0, 0)),  # query tile
            pl.BlockSpec((block_b, T_p, Dv), lambda b: (b, 0, 0)),   # values tile
            # Constant index maps -> weights stay VMEM-resident across steps.
            # (pl.Buffered(1) would drop their second pipeline buffer; left at
            # the default for compatibility — they are small here.)
            pl.BlockSpec((Din, Dout), lambda b: (0, 0)),             # W1
            pl.BlockSpec((1, Dout), lambda b: (0, 0)),               # b1
            pl.BlockSpec((1, Dout), lambda b: (0, 0)),               # Vw row
            pl.BlockSpec(memory_space=pltpu.MemorySpace.SMEM),       # Vb scalar
        ],
        out_specs=[
            pl.BlockSpec((block_b, Dv), lambda b: (b, 0)),           # context
            pl.BlockSpec((block_b, T_p), lambda b: (b, 0)),          # attn (lane-dense)
            pl.BlockSpec((block_b, T_p), lambda b: (b, 0)),          # score (lane-dense)
        ],
    )

    out_shapes = (
        jax.ShapeDtypeStruct((Bp, Dv), jnp.float32),
        jax.ShapeDtypeStruct((Bp, T_p), jnp.float32),
        jax.ShapeDtypeStruct((Bp, T_p), jnp.float32),
    )

    ctx, attn, score = pl.pallas_call(
        kernel,
        out_shape=out_shapes,
        grid_spec=grid_spec,
        compiler_params=pltpu.CompilerParams(
            dimension_semantics=("parallel",),
            vmem_limit_bytes=vmem_limit),
    )(query, values, w1, b1, vw_row, vb_s)

    # Restore the PyTorch output contract: (B, Dv), (B, T, 1), (B, T, 1).
    ctx = ctx[:B]
    attn = attn[:B, :T].reshape(B, T, 1)
    score = score[:B, :T].reshape(B, T, 1)
    return ctx, attn, score


def reference(query, values, w1, b1, vw, vb):
    h = jnp.tanh(jnp.einsum("btd,do->bto", query, w1) + b1.reshape(1, 1, -1))
    score = jnp.einsum("bto,op->btp", h, vw) + vb
    attn = jax.nn.softmax(score, axis=1)
    ctx = jnp.sum(attn * values, axis=1)
    return ctx, attn, score


if __name__ == "__main__":
    key = jax.random.PRNGKey(0)
    kq, kv, kw1, kb1, kvw, kvb, kq2, kv2 = jax.random.split(key, 8)

    # Parameter shapes follow nn.Linear(in_units, out_units) / nn.Linear(out_units, 1),
    # pre-transposed so the kernel does x @ W.
    B, T, Din, Dout, Dv = 2, 8, 32, 16, 32
    query = jax.random.normal(kq, (B, T, Din), dtype=jnp.float32)
    values = jax.random.normal(kv, (B, T, Dv), dtype=jnp.float32)
    w1 = jax.random.normal(kw1, (Din, Dout), dtype=jnp.float32) * 0.1
    b1 = jax.random.normal(kb1, (1, Dout), dtype=jnp.float32) * 0.1
    vw = jax.random.normal(kvw, (Dout, 1), dtype=jnp.float32) * 0.1
    vb = jax.random.normal(kvb, (1, 1), dtype=jnp.float32) * 0.1

    # ---- case 1: f32 path, shapes straight from the module ------------------
    ctx, attn, score = self_attention(query, values, w1, b1, vw, vb)
    jax.block_until_ready((ctx, attn, score))
    ctx_r, attn_r, score_r = reference(query, values, w1, b1, vw, vb)
    assert jnp.allclose(ctx, ctx_r, atol=1e-5, rtol=1e-5)
    assert jnp.allclose(attn, attn_r, atol=1e-5, rtol=1e-5)
    assert jnp.allclose(score, score_r, atol=1e-5, rtol=1e-5)

    # ---- case 2: bf16 MXU path (f32 accumulation) ----------------------------
    ctx_b, attn_b, score_b = self_attention(query, values, w1, b1, vw, vb,
                                            compute_dtype=jnp.bfloat16)
    jax.block_until_ready((ctx_b, attn_b, score_b))
    assert jnp.allclose(ctx_b, ctx_r, atol=3e-2, rtol=3e-2)
    assert jnp.allclose(attn_b, attn_r, atol=3e-2, rtol=3e-2)
    assert jnp.allclose(score_b, score_r, atol=3e-2, rtol=3e-2)

    # ---- case 3: multi-step grid + ragged T (sequence padding/masking) ------
    B2, T2 = 16, 6
    query2 = jax.random.normal(kq2, (B2, T2, Din), dtype=jnp.float32)
    values2 = jax.random.normal(kv2, (B2, T2, Dv), dtype=jnp.float32)
    ctx2, attn2, score2 = self_attention(query2, values2, w1, b1, vw, vb,
                                         block_b=8)
    jax.block_until_ready((ctx2, attn2, score2))
    ctx2_r, attn2_r, score2_r = reference(query2, values2, w1, b1, vw, vb)
    assert jnp.allclose(ctx2, ctx2_r, atol=1e-5, rtol=1e-5)
    assert jnp.allclose(attn2, attn2_r, atol=1e-5, rtol=1e-5)
    assert jnp.allclose(score2, score2_r, atol=1e-5, rtol=1e-5)

    print("KERNEL_OK")
</pallas_src>

<mosaic_0001>
module attributes {stable_mosaic.version = 11 : i64} {
  func.func @_self_attention_kernel(%arg0: i32, %arg1: memref<2x8x32xf32, #tpu.memory_space<vmem>>, %arg2: memref<2x8x32xf32, #tpu.memory_space<vmem>>, %arg3: memref<32x16xf32, #tpu.memory_space<vmem>>, %arg4: memref<1x16xf32, #tpu.memory_space<vmem>>, %arg5: memref<1x16xf32, #tpu.memory_space<vmem>>, %arg6: memref<1xf32, #tpu.memory_space<smem>>, %arg7: memref<2x32xf32, #tpu.memory_space<vmem>>, %arg8: memref<2x8xf32, #tpu.memory_space<vmem>>, %arg9: memref<2x8xf32, #tpu.memory_space<vmem>>) attributes {dimension_semantics = [#tpu.dimension_semantics<parallel>], iteration_bounds = array<i64: 1>, scalar_prefetch = 0 : i64, scratch_operands = 0 : i64, tpu.core_type = #tpu.core_type<tc>, window_params = [{transform_indices = @transform_0, window_bounds = array<i64: 2, 8, 32>}, {transform_indices = @transform_1, window_bounds = array<i64: 2, 8, 32>}, {pipeline_mode = #tpu.pipeline_mode<synchronous>, transform_indices = @transform_2, window_bounds = array<i64: 32, 16>}, {pipeline_mode = #tpu.pipeline_mode<synchronous>, transform_indices = @transform_3, window_bounds = array<i64: 1, 16>}, {pipeline_mode = #tpu.pipeline_mode<synchronous>, transform_indices = @transform_4, window_bounds = array<i64: 1, 16>}, {transform_indices = @transform_5, window_bounds = array<i64: 1>}, {transform_indices = @transform_6, window_bounds = array<i64: 2, 32>}, {transform_indices = @transform_7, window_bounds = array<i64: 2, 8>}, {transform_indices = @transform_8, window_bounds = array<i64: 2, 8>}]} {
    %c0 = arith.constant 0 : index
    %c0_0 = arith.constant 0 : index
    %c0_1 = arith.constant 0 : index
    %0 = vector.load %arg1[%c0, %c0_0, %c0_1] : memref<2x8x32xf32, #tpu.memory_space<vmem>>, vector<2x8x32xf32>
    %1 = vector.shape_cast %0 : vector<2x8x32xf32> to vector<16x32xf32>
    %c0_2 = arith.constant 0 : index
    %c0_3 = arith.constant 0 : index
    %2 = vector.load %arg3[%c0_2, %c0_3] : memref<32x16xf32, #tpu.memory_space<vmem>>, vector<32x16xf32>
    %cst = arith.constant dense<0.000000e+00> : vector<16x16xf32>
    %3 = tpu.matmul %1, %2, %cst {dimension_numbers = #tpu.dot_dimension_numbers<[1], [0], [0], [1], [0, 0, 1, 1], [], []>} : vector<16x32xf32>, vector<32x16xf32>, vector<16x16xf32> -> vector<16x16xf32>
    %c0_4 = arith.constant 0 : index
    %c0_5 = arith.constant 0 : index
    %4 = vector.load %arg4[%c0_4, %c0_5] : memref<1x16xf32, #tpu.memory_space<vmem>>, vector<1x16xf32>
    %5 = vector.broadcast %4 : vector<1x16xf32> to vector<16x16xf32>
    %6 = arith.addf %3, %5 : vector<16x16xf32>
    %7 = math.tanh %6 : vector<16x16xf32>
    %8 = vector.shape_cast %7 : vector<16x16xf32> to vector<2x8x16xf32>
    %c0_6 = arith.constant 0 : index
    %c0_7 = arith.constant 0 : index
    %9 = vector.load %arg5[%c0_6, %c0_7] : memref<1x16xf32, #tpu.memory_space<vmem>>, vector<1x16xf32>
    %10 = vector.shape_cast %9 : vector<1x16xf32> to vector<1x1x16xf32>
    %11 = vector.broadcast %10 : vector<1x1x16xf32> to vector<2x8x16xf32>
    %12 = arith.mulf %8, %11 : vector<2x8x16xf32>
    %cst_8 = arith.constant dense<0.000000e+00> : vector<2x8xf32>
    %13 = vector.multi_reduction <add>, %12, %cst_8 [2] : vector<2x8x16xf32> to vector<2x8xf32>
    %c0_9 = arith.constant 0 : index
    %14 = memref.load %arg6[%c0_9] : memref<1xf32, #tpu.memory_space<smem>>
    %15 = vector.broadcast %14 : f32 to vector<2x8xf32>
    %16 = arith.addf %13, %15 : vector<2x8xf32>
    %c0_10 = arith.constant 0 : index
    %c0_11 = arith.constant 0 : index
    %17 = vector.load %arg9[%c0_10, %c0_11] : memref<2x8xf32, #tpu.memory_space<vmem>>, vector<2x8xf32>
    tpu.vector_store %arg9[%c0_10, %c0_11], %16 {strides = array<i32>} : memref<2x8xf32, #tpu.memory_space<vmem>>, vector<2x8xf32>,
    %cst_12 = arith.constant dense<0xFF800000> : vector<2xf32>
    %18 = vector.multi_reduction <maximumf>, %16, %cst_12 [1] : vector<2x8xf32> to vector<2xf32>
    %19 = vector.shape_cast %18 : vector<2xf32> to vector<2x1xf32>
    %20 = vector.broadcast %19 : vector<2x1xf32> to vector<2x8xf32>
    %21 = arith.subf %16, %20 : vector<2x8xf32>
    %22 = math.exp %21 : vector<2x8xf32>
    %cst_13 = arith.constant dense<0.000000e+00> : vector<2xf32>
    %23 = vector.multi_reduction <add>, %22, %cst_13 [1] : vector<2x8xf32> to vector<2xf32>
    %24 = vector.shape_cast %23 : vector<2xf32> to vector<2x1xf32>
    %25 = tpu.reciprocal %24 {approx = true} : vector<2x1xf32> -> vector<2x1xf32>
    %26 = arith.mulf %24, %25 : vector<2x1xf32>
    %cst_14 = arith.constant 2.000000e+00 : f32
    %27 = vector.broadcast %cst_14 : f32 to vector<2x1xf32>
    %28 = arith.subf %27, %26 : vector<2x1xf32>
    %29 = arith.mulf %25, %28 : vector<2x1xf32>
    %30 = arith.mulf %24, %29 : vector<2x1xf32>
    %cst_15 = arith.constant 2.000000e+00 : f32
    %31 = vector.broadcast %cst_15 : f32 to vector<2x1xf32>
    %32 = arith.subf %31, %30 : vector<2x1xf32>
    %33 = arith.mulf %29, %32 : vector<2x1xf32>
    %34 = vector.broadcast %33 : vector<2x1xf32> to vector<2x8xf32>
    %35 = arith.mulf %22, %34 : vector<2x8xf32>
    %c0_16 = arith.constant 0 : index
    %c0_17 = arith.constant 0 : index
    %36 = vector.load %arg8[%c0_16, %c0_17] : memref<2x8xf32, #tpu.memory_space<vmem>>, vector<2x8xf32>
    tpu.vector_store %arg8[%c0_16, %c0_17], %35 {strides = array<i32>} : memref<2x8xf32, #tpu.memory_space<vmem>>, vector<2x8xf32>,
    %37 = vector.shape_cast %35 : vector<2x8xf32> to vector<2x8x1xf32>
    %c0_18 = arith.constant 0 : index
    %c0_19 = arith.constant 0 : index
    %c0_20 = arith.constant 0 : index
    %38 = vector.load %arg2[%c0_18, %c0_19, %c0_20] : memref<2x8x32xf32, #tpu.memory_space<vmem>>, vector<2x8x32xf32>
    %39 = vector.broadcast %37 : vector<2x8x1xf32> to vector<2x8x32xf32>
    %40 = arith.mulf %39, %38 : vector<2x8x32xf32>
    %cst_21 = arith.constant dense<0.000000e+00> : vector<2x32xf32>
    %41 = vector.multi_reduction <add>, %40, %cst_21 [1] : vector<2x8x32xf32> to vector<2x32xf32>
    %c0_22 = arith.constant 0 : index
    %c0_23 = arith.constant 0 : index
    %42 = vector.load %arg7[%c0_22, %c0_23] : memref<2x32xf32, #tpu.memory_space<vmem>>, vector<2x32xf32>
    tpu.vector_store %arg7[%c0_22, %c0_23], %41 {strides = array<i32>} : memref<2x32xf32, #tpu.memory_space<vmem>>, vector<2x32xf32>,
    return
  }
  func.func @transform_0(%arg0: i32) -> (i32, i32, i32) {
    %c0_i32 = arith.constant 0 : i32
    %c0_i32_0 = arith.constant 0 : i32
    %c0_i32_1 = arith.constant 0 : i32
    return %arg0, %c0_i32, %c0_i32_0 : i32, i32, i32
  }
  func.func @transform_1(%arg0: i32) -> (i32, i32, i32) {
    %c0_i32 = arith.constant 0 : i32
    %c0_i32_0 = arith.constant 0 : i32
    %c0_i32_1 = arith.constant 0 : i32
    return %arg0, %c0_i32, %c0_i32_0 : i32, i32, i32
  }
  func.func @transform_2(%arg0: i32) -> (i32, i32) {
    %c0_i32 = arith.constant 0 : i32
    %c0_i32_0 = arith.constant 0 : i32
    %c0_i32_1 = arith.constant 0 : i32
    return %c0_i32, %c0_i32_0 : i32, i32
  }
  func.func @transform_3(%arg0: i32) -> (i32, i32) {
    %c0_i32 = arith.constant 0 : i32
    %c0_i32_0 = arith.constant 0 : i32
    %c0_i32_1 = arith.constant 0 : i32
    return %c0_i32, %c0_i32_0 : i32, i32
  }
  func.func @transform_4(%arg0: i32) -> (i32, i32) {
    %c0_i32 = arith.constant 0 : i32
    %c0_i32_0 = arith.constant 0 : i32
    %c0_i32_1 = arith.constant 0 : i32
    return %c0_i32, %c0_i32_0 : i32, i32
  }
  func.func @transform_5(%arg0: i32) -> i32 {
    %c0_i32 = arith.constant 0 : i32
    %c0_i32_0 = arith.constant 0 : i32
    return %c0_i32 : i32
  }
  func.func @transform_6(%arg0: i32) -> (i32, i32) {
    %c0_i32 = arith.constant 0 : i32
    %c0_i32_0 = arith.constant 0 : i32
    return %arg0, %c0_i32 : i32, i32
  }
  func.func @transform_7(%arg0: i32) -> (i32, i32) {
    %c0_i32 = arith.constant 0 : i32
    %c0_i32_0 = arith.constant 0 : i32
    return %arg0, %c0_i32 : i32, i32
  }
  func.func @transform_8(%arg0: i32) -> (i32, i32) {
    %c0_i32 = arith.constant 0 : i32
    %c0_i32_0 = arith.constant 0 : i32
    return %arg0, %c0_i32 : i32, i32
  }
}

</mosaic_0001>

<bundles_post_ra>
// kernel: tpu_custom_call.1
= control target key start
LH: loop header
LB: loop body
LE: loop exit
PB: predicated region body
PF: predicated region fallthrough
CT: control target
= control target key end

     0   :  { %15 = vsyncpa [#allocation4], 0  ;;  %vm42_vm0 = vcmask 261120   ;;  %s522_s0 = inlined_call_operand.vmem [shape: f32[2,8,32], index: 0, kind: input, shape index: {}]   ;;  %s523_s1 = inlined_call_operand.vmem [shape: f32[2,8,32], index: 1, kind: input, shape index: {}]   ;;  %s524_s2 = inlined_call_operand.vmem [shape: f32[32,16], index: 2, kind: input, shape index: {}]   ;;  %s525_s3 = inlined_call_operand.vmem [shape: f32[1,16], index: 3, kind: input, shape index: {}]   ;;  %s526_s4 = inlined_call_operand.vmem [shape: f32[1,16], index: 4, kind: input, shape index: {}]   ;;  %s527_s5 = inlined_call_operand.<no memory space> [shape: f32[1], index: 5, kind: input, shape index: {}]   ;;  %s528_s6 = inlined_call_operand.hbm [shape: f32[2,32], index: 6, kind: output, shape index: {0}]   ;;  %s529_s7 = inlined_call_operand.hbm [shape: f32[2,8], index: 7, kind: output, shape index: {1}]   ;;  %s530_s8 = inlined_call_operand.hbm [shape: f32[2,8], index: 8, kind: output, shape index: {2}]  }
   0x1   :  { %v34_v0 = vld [vmem:[%s524_s2 + $0x18] sm:$0xff]  ;;  %v33_v1 = vld [vmem:[%s524_s2 + $0x10] sm:$0xff]  ;;  %v29_v2 = vld [vmem:[%s522_s0] sm:$0xff] }
   0x2   :  { %320 = vmatprep.subr.mxu0 %v34_v0  ;;  %v32_v3 = vld [vmem:[%s524_s2 + $0x8] sm:$0xff]  ;;  %328 = vmatprep.mubr.msk.f32.mxu0 %vm42_vm0, %v29_v2 }
   0x3   :  { %321 = vmatpush3.msra.mxu0 %v34_v0 }
   0x4   :  { %16 = vsyncpa [#allocation6], 0  ;;  %322 = vmatprep.subr.mxu0 %v33_v1  ;;  %v31_v4 = vld [vmem:[%s524_s2] sm:$0xff]  ;;  %v30_v5 = vld [vmem:[%s522_s0 + $0x8] sm:$0xff]  ;;  %vm135_vm1 = vcmask 130048   ;;  %v148_v18 = vlaneseq  ;;  %v143_v21 = vstv %s527_s5  ;;  %vm158_vm2 = vcmask 1041409  }
   0x5   :  { %323 = vmatpush3.msra.mxu0 %v33_v1  ;;  %v310_v6 = vld [vmem:[%s525_s3] ss:$0 sm:$0xff]  ;;  %vm161_vm3 = vcmask 58368   ;;  %v411_v31 = vmov 0   ;;  %v244_v0 = vld [vmem:[%s523_s1 + $0x8] sm:$0xff]  ;;  %s412_s22 = smov [#allocation5]  }
   0x6   :  { %324 = vmatprep.subr.mxu0 %v32_v3  ;;  %v313_v13 = vld [vmem:[%s526_s4] ss:$0 sm:$0xff]  ;;  %v149_v19 = vand.u32 127, %v148_v18  ;;  %v151_v20 = vshrl.u32 %v148_v18, 7  ;;  %336 = vset.pattern.permute.xlu0 %v411_v31  ;;  %s285_s23 = sshll.u32 %s412_s22, 4  ;;  %s413_s24 = smov [#allocation7]   ;;  %s286_s23 = int_to_ptr.vmem [resolvable:$true] %s285_s23 }
   0x7   :  { %325 = vmatpush3.msra.mxu0 %v32_v3  ;;  %335 = vset.pattern.permute.xlu1 %v411_v31  ;;  %v243_v61 = vld [vmem:[%s523_s1] sm:$0xff]  ;;  %s295_s25 = sshll.u32 %s413_s24, 4  ;;  %s347_s1 = scalar_lea.vmem %s286_s23, 32  ;;  %s296_s25 = int_to_ptr.vmem [resolvable:$true] %s295_s25 }
   0x8   :  { %326 = vmatprep.subr.mxu0 %v31_v4  ;;  %v489_v23 = vsub.s32 %v149_v19, %v151_v20  ;;  %v169_v32 = vsub.s32 0, %v151_v20  ;;  %v173_v33 = vsub.s32 1, %v151_v20  ;;  %p348_p0 = scmp.ne.s32.totalorder %s286_s23, %s347_s1  ;;  %p352_p1 = scmp.lt.s32.totalorder %s286_s23, %s286_s23 }
   0x9   :  { %327 = vmatpush3.msra.mxu0 %v31_v4  ;;  %p353_p2 = scmp.lt.s32.totalorder %s347_s1, %s347_s1 }
   0xa   :  { %329 = vmatmul.mubr.msk.f32.vlgmr.msra.gmra.mxu0 %vm42_vm0, %v30_v5 }
   0xb   :  { %p354_p3 = por %p353_p2, %p352_p1 }
   0xd   :  { %p355_p4 = pnand %p354_p3, %p348_p0 }
  0xca   :  { %v330_v7 = vpop.f32.mrf.mxu0 }
  0xcb   :  { %v121_v8 = vadd.f32 %v330_v7, %v310_v6 }
  0xcc   :  { %v115_v9 = vpop.f32.mrf.mxu0 }
  0xcd   :  { %v116_v10 = vadd.f32 %v310_v6, %v115_v9  ;;  %337 = vtanh.f32 %v121_v8 }
  0xcf   :  { %339 = vtanh.f32 %v116_v10 }
  0xda   :  { %v338_v11 = vpop.eup %337 }
  0xdb   :  { %v134_v16 = vmul.f32 %v338_v11, %v313_v13 }
  0xdc   :  { %v340_v12 = vpop.eup %339 }
  0xdd   :  { %v133_v14 = vmul.f32 %v340_v12, %v313_v13  ;;  %v139_v17 = vsel %vm135_vm1, %v134_v16, 0.0 }
  0xdf   :  { %v136_v15 = vsel %vm135_vm1, %v133_v14, 0.0 }
  0xe0   :  { %137 = vadd.xlane.f32.xlu0 %v136_v15 }
  0xe4   :  { %140 = vadd.xlane.f32.xlu0 %v139_v17 }
 0x169   :  { %v138_v22 = vpop.xlane.xlu0 %137 }
 0x16a   :  { %v144_v24 = vadd.f32 %v143_v21, %v138_v22 }
 0x16c   :  { %v153_v27 = vrot.slane %v144_v24, %v489_v23 }
 0x16d   :  { %v141_v25 = vpop.xlane.xlu0 %140 }
 0x16e   :  { %v145_v26 = vadd.f32 %v143_v21, %v141_v25 }
 0x170   :  { %v157_v28 = vrot.slane %v145_v26, %v489_v23 }
 0x172   :  { %v159_v29 = vsel %vm158_vm2, %v157_v28, %v153_v27 }
 0x173   :  { %v163_v30 = vsel %vm161_vm3, %v159_v29, -inf  ;;  %162 = vst.msk [vmem:[#allocation7] sm:$0x3] %vm161_vm3, %v159_v29 }
 0x174   :  { %164 = vmax.xlane.f32.xlu1 %v163_v30 }
 0x1fd   :  { %v165_v34 = vpop.xlane.xlu1 %164 }
 0x1fe   :  { %v170_v35 = vrot.slane %v165_v34, %v169_v32  ;;  %v174_v36 = vrot.slane %v165_v34, %v173_v33 }
 0x200   :  { %v177_v37 = vsub.f32 %v144_v24, %v170_v35  ;;  %v178_v38 = vsub.f32 %v145_v26, %v174_v36 }
 0x202   :  { %v179_v39 = vmul.f32 1.442695, %v177_v37  ;;  %v181_v40 = vmul.f32 1.442695, %v178_v38 }
 0x204   :  { %341 = vpow2.f32 %v179_v39 }
 0x205   :  { %343 = vpow2.f32 %v181_v40 }
 0x211   :  { %v342_v41 = vpop.eup %341 }
 0x212   :  { %v344_v42 = vpop.eup %343  ;;  %186 = vperm.xlu1 %335, %v342_v41  }
 0x213   :  { %189 = vperm.xlu0 %336, %v344_v42  }
 0x28d   :  { %v187_v43 = vpop.permute.xlu1 %186 }
 0x28e   :  { %v190_v44 = vpop.permute.xlu0 %189  ;;  %v194_v45 = vrot.slane %v187_v43, %v489_v23 }
 0x28f   :  { %v198_v46 = vrot.slane %v190_v44, %v489_v23 }
 0x291   :  { %v199_v47 = vsel %vm158_vm2, %v198_v46, %v194_v45 }
 0x292   :  { %v201_v48 = vsel %vm161_vm3, %v199_v47, 0.0 }
 0x293   :  { %202 = vadd.xlane.f32.xlu1 %v201_v48 }
 0x31c   :  { %v203_v49 = vpop.xlane.xlu1 %202 }
 0x31d   :  { %345 = vrcp.f32 %v203_v49 }
 0x32a   :  { %v346_v50 = vpop.eup %345 }
 0x32b   :  { %v205_v51 = vmul.f32 %v346_v50, %v203_v49 }
 0x32d   :  { %v206_v52 = vsub.f32 2.0, %v205_v51 }
 0x32f   :  { %v207_v53 = vmul.f32 %v346_v50, %v206_v52 }
 0x331   :  { %v208_v54 = vmul.f32 %v207_v53, %v203_v49 }
 0x333   :  { %v209_v55 = vsub.f32 2.0, %v208_v54 }
 0x335   :  { %v210_v56 = vmul.f32 %v209_v55, %v207_v53 }
 0x337   :  { %v215_v57 = vrot.slane %v210_v56, %v169_v32  ;;  %v219_v59 = vrot.slane %v210_v56, %v173_v33 }
 0x339   :  { %v222_v58 = vmul.f32 %v342_v41, %v215_v57  ;;  %v223_v60 = vmul.f32 %v344_v42, %v219_v59 }
 0x33b   :  { %227 = vperm.xlu0 %336, %v222_v58  }
 0x33f   :  { %230 = vperm.xlu0 %336, %v223_v60  }
 0x3b6   :  { %v228_v62 = vpop.permute.xlu0 %227 }
 0x3b7   :  { %v247_v63 = vmul.f32 %v243_v61, %v228_v62  ;;  %v235_v4 = vrot.slane %v228_v62, %v489_v23 }
 0x3b9   :  { %v249_v1 = vsel %vm42_vm0, %v247_v63, 0.0 }
 0x3ba   :  { %v250_v2 = vrot.slane %v249_v1, 4  ;;  %v231_v3 = vpop.permute.xlu0 %230 }
 0x3bb   :  { %v239_v5 = vrot.slane %v231_v3, %v489_v23  ;;  %v248_v6 = vmul.f32 %v244_v0, %v231_v3 }
 0x3bc   :  { %v251_v7 = vadd.f32 %v250_v2, %v249_v1 }
 0x3bd   :  { %v256_v8 = vsel %vm42_vm0, %v248_v6, 0.0  ;;  %v240_v9 = vsel %vm158_vm2, %v239_v5, %v235_v4 }
 0x3be   :  { %v252_v10 = vrot.slane %v251_v7, 2  ;;  %v257_v11 = vrot.slane %v256_v8, 4  ;;  %242 = vst.msk [vmem:[#allocation5] sm:$0x3] %vm161_vm3, %v240_v9 }
 0x3bf   :  { %358 = shalt.err (!%p355_p4)
}
 0x3c0   :  { %288 = dma.vmem_to_hbm [thread:$0]  %s286_s23, 32, %s529_s7, [#allocation6]   ;;  %v253_v12 = vadd.f32 %v252_v10, %v251_v7  ;;  %v258_v13 = vadd.f32 %v257_v11, %v256_v8 }
 0x3c1   :  { %s367_s28 = scalar_lea.vmem %s296_s25, 32  ;;  %p372_p6 = scmp.lt.s32.totalorder %s296_s25, %s296_s25 }
 0x3c2   :  { %p368_p5 = scmp.ne.s32.totalorder %s296_s25, %s367_s28  ;;  %p373_p7 = scmp.lt.s32.totalorder %s367_s28, %s367_s28 }
 0x3c4   :  { %p374_p8 = por %p373_p7, %p372_p6 }
 0x3c6   :  { %p375_p9 = pnand %p374_p8, %p368_p5 }
 0x3c8   :  { %378 = shalt.err (!%p375_p9)
}
 0x3c9   :  { %298 = dma.vmem_to_hbm [thread:$0]  %s296_s25, 32, %s530_s8, [#allocation6]   ;;  %v259_v14 = vrot.slane %v258_v13, 2  ;;  %v254_v16 = vrot.slane %v253_v12, 1  ;;  %vm267_vm4 = vcmask 254976  }
 0x3ca   :  { %s414_s9 = smov [#allocation3]  }
 0x3cb   :  { %v260_v15 = vadd.f32 %v259_v14, %v258_v13  ;;  %s275_s10 = sshll.u32 %s414_s9, 4  ;;  %v255_v18 = vadd.f32 %v254_v16, %v253_v12  ;;  %s276_s10 = int_to_ptr.vmem [resolvable:$true] %s275_s10 }
 0x3cc   :  { %s387_s7 = scalar_lea.vmem %s276_s10, 32  ;;  %p392_p11 = scmp.lt.s32.totalorder %s276_s10, %s276_s10 }
 0x3cd   :  { %v261_v17 = vrot.slane %v260_v15, 1  ;;  %p388_p10 = scmp.ne.s32.totalorder %s276_s10, %s387_s7  ;;  %p393_p12 = scmp.lt.s32.totalorder %s387_s7, %s387_s7 }
 0x3cf   :  { %v262_v19 = vadd.f32 %v261_v17, %v260_v15  ;;  %p394_p13 = por %p393_p12, %p392_p11 }
 0x3d1   :  { %v265_v20 = vsel %vm158_vm2, %v262_v19, %v255_v18  ;;  %p395_p0 = pnand %p394_p13, %p388_p10 }
 0x3d2   :  { %268 = vst.msk [vmem:[#allocation3] sm:$0x3] %vm267_vm4, %v265_v20 }
 0x3d3   :  { %398 = shalt.err (!%p395_p0)
}
 0x3d4   :  { %278 = dma.vmem_to_hbm [thread:$0]  %s276_s10, 32, %s528_s6, [#allocation4]  }
 0x3d5   :  { %407 = dma.done.wait [#allocation4], 32  }
 0x3d6   :  { %408 = vsyncadd [#allocation4], 4294967264 }
 0x3d7   :  { %409 = dma.done.wait [#allocation6], 64  }
 0x3d8   :  { %410 = vsyncadd [#allocation6], 4294967232 }
 0x3d9   :  { %308 = vsyncpa [#allocation4], 1 }
 0x3da   :  { %309 = vsyncpa [#allocation6], 1 }

</bundles_post_ra>
